<compile_context>
chip_gen: v7x
topology: tpu7x:2x2x1
jax: 0.10.0
libtpu: 0.0.40
codegen_flags: <defaults>
</compile_context>

<pallas_src>
import functools

import jax
import jax.numpy as jnp
from jax import lax
from jax.experimental import pallas as pl
from jax.experimental.pallas import tpu as pltpu

USE_RELU = False          # args.use_relu -> pick [Tanh, ReLU][use_relu]
MLP_HIDDEN_DIM = 32       # args.mlp_hidden_dim
CRITIC_INPUT_DIM = 48     # critic_input_dim
BATCH = 256               # example batch


def _activate(x, use_relu):
    return jnp.maximum(x, 0.0) if use_relu else jnp.tanh(x)


def critic_mlp_kernel(x_ref, w1_ref, b12_ref, w2_ref, w3_ref, b3_ref, out_ref,
                      *, use_relu):
    """Fused 3-layer MLP on one batch tile; batch sits on the lane axis."""
    hp = lax.Precision.HIGHEST
    x = x_ref[...]                                                   # (TB, Din)
    w1 = w1_ref[...]                                                 # (H, Din)
    # h1^T = w1 . x^T : contract Din of both operands -> (H, TB).
    h1t = lax.dot_general(w1, x,
                          dimension_numbers=(((1,), (1,)), ((), ())),
                          precision=hp,
                          preferred_element_type=jnp.float32)        # (H, TB)
    h1t = _activate(h1t + b12_ref[:, 0:1], use_relu)
    # h2^T = w2 @ h1^T  (plain matmul, batch stays on lanes).
    h2t = jnp.dot(w2_ref[...], h1t, precision=hp,
                  preferred_element_type=jnp.float32)                # (H, TB)
    h2t = _activate(h2t + b12_ref[:, 1:2], use_relu)
    # v = w3 @ h2^T -> lane-dense (1, TB) value row.
    v = jnp.dot(w3_ref[...], h2t, precision=hp,
                preferred_element_type=jnp.float32)                  # (1, TB)
    out_ref[...] = v + b3_ref[0]                                     # scalar bias from SMEM


def _pick_batch_tile(B):
    """>= 2 'parallel' tiles on dual-TensorCore chips (v7x); one big tile on
    single-TC chips (v5e/v6e) so the per-step pipeline overhead is paid once."""
    kind = ""
    try:
        kind = jax.devices()[0].device_kind.lower()
    except Exception:
        pass
    dual_tc = "v7" in kind
    if dual_tc and B >= 256 and B % 256 == 0:
        return B // 2          # two lane-aligned tiles -> both TCs busy
    return B                   # full-array tile: no padding, minimal overhead


def critic_mlp_forward(x, w1, b12, w2, w3, b3, *, use_relu=USE_RELU,
                       batch_tile=None):
    B, Din = x.shape
    H = w1.shape[0]
    assert w1.shape == (H, Din) and w2.shape == (H, H)      # PyTorch (out, in)
    assert b12.shape == (H, 2)                              # [b1 | b2] columns
    assert w3.shape == (1, H) and b3.shape == (1,)

    if batch_tile is None:
        batch_tile = _pick_batch_tile(B)
    if B % batch_tile != 0:
        batch_tile = B           # fall back to one full tile; avoids jnp.pad
    num_tiles = B // batch_tile

    kernel = functools.partial(critic_mlp_kernel, use_relu=use_relu)

    out_row = pl.pallas_call(
        kernel,
        out_shape=jax.ShapeDtypeStruct((1, B), jnp.float32),
        grid_spec=pl.GridSpec(
            grid=(num_tiles,),
            in_specs=[
                pl.BlockSpec((batch_tile, Din), lambda i: (i, 0)),   # x tile
                pl.BlockSpec((H, Din), lambda i: (0, 0)),            # w1 (out,in), resident
                pl.BlockSpec((H, 2), lambda i: (0, 0)),              # b1|b2 columns
                pl.BlockSpec((H, H), lambda i: (0, 0)),              # w2
                pl.BlockSpec((1, H), lambda i: (0, 0)),              # w3 row
                pl.BlockSpec(memory_space=pltpu.MemorySpace.SMEM),   # b3 scalar
            ],
            # Lane-dense value row: tile i writes lanes [i*TB, (i+1)*TB).
            out_specs=pl.BlockSpec((1, batch_tile), lambda i: (0, i)),
        ),
        compiler_params=pltpu.CompilerParams(
            dimension_semantics=("parallel",),      # batch tiles -> v7x megacore
            vmem_limit_bytes=32 * 1024 * 1024,      # v7x-safe ceiling; tiles are ~KBs
        ),
    )(x, w1, b12, w2, w3, b3)

    # Layout plumbing only: (1, B) lane-dense row -> (B, 1) column.
    return out_row.reshape(B, 1)


def orthogonal_weight(key, out_dim, in_dim, gain=1.0):
    # Mirrors torch.nn.init.orthogonal_: QR of a Gaussian matrix, sign-corrected,
    # shaped (out_dim, in_dim) — native PyTorch Linear layout.
    rows, cols = out_dim, in_dim
    flat = jax.random.normal(key, (max(rows, cols), min(rows, cols)),
                             dtype=jnp.float32)
    q, r = jnp.linalg.qr(flat)
    q = q * jnp.sign(jnp.diagonal(r))[None, :]
    if rows < cols:
        q = q.T
    return (gain * q[:rows, :cols]).astype(jnp.float32)


def init_critic_params(key, critic_input_dim, hidden_dim):
    k1, k2, k3 = jax.random.split(key, 3)
    w1 = orthogonal_weight(k1, hidden_dim, critic_input_dim)     # (H, Din)
    w2 = orthogonal_weight(k2, hidden_dim, hidden_dim)           # (H, H)
    w3 = orthogonal_weight(k3, 1, hidden_dim)                    # (1, H)
    b12 = jnp.zeros((hidden_dim, 2), jnp.float32)                # [b1 | b2]
    b3 = jnp.zeros((1,), jnp.float32)
    return w1, b12, w2, w3, b3


def reference_forward(x, w1, b12, w2, w3, b3, use_relu=USE_RELU):
    hp = lax.Precision.HIGHEST
    h1 = _activate(jnp.dot(x, w1.T, precision=hp) + b12[:, 0], use_relu)
    h2 = _activate(jnp.dot(h1, w2.T, precision=hp) + b12[:, 1], use_relu)
    return jnp.dot(h2, w3.T, precision=hp) + b3                  # (B, 1)


if __name__ == "__main__":
    key = jax.random.PRNGKey(0)
    k_x, k_p = jax.random.split(key)

    x = jax.random.normal(k_x, (BATCH, CRITIC_INPUT_DIM), dtype=jnp.float32)
    params = init_critic_params(k_p, CRITIC_INPUT_DIM, MLP_HIDDEN_DIM)

    value = critic_mlp_forward(x, *params)
    value = jax.block_until_ready(value)

    ref = reference_forward(x, *params)
    assert value.shape == (BATCH, 1)
    assert jnp.allclose(value, ref, atol=1e-5, rtol=1e-5), "mismatch vs reference"

    print("KERNEL_OK")
</pallas_src>

<mosaic_0001>
module attributes {stable_mosaic.version = 11 : i64} {
  func.func @critic_mlp_kernel(%arg0: i32, %arg1: memref<256x48xf32, #tpu.memory_space<vmem>>, %arg2: memref<32x48xf32, #tpu.memory_space<vmem>>, %arg3: memref<32x2xf32, #tpu.memory_space<vmem>>, %arg4: memref<32x32xf32, #tpu.memory_space<vmem>>, %arg5: memref<1x32xf32, #tpu.memory_space<vmem>>, %arg6: memref<1xf32, #tpu.memory_space<smem>>, %arg7: memref<1x256xf32, #tpu.memory_space<vmem>>) attributes {dimension_semantics = [#tpu.dimension_semantics<parallel>], iteration_bounds = array<i64: 1>, scalar_prefetch = 0 : i64, scratch_operands = 0 : i64, tpu.core_type = #tpu.core_type<tc>, window_params = [{transform_indices = @transform_0, window_bounds = array<i64: 256, 48>}, {pipeline_mode = #tpu.pipeline_mode<synchronous>, transform_indices = @transform_1, window_bounds = array<i64: 32, 48>}, {pipeline_mode = #tpu.pipeline_mode<synchronous>, transform_indices = @transform_2, window_bounds = array<i64: 32, 2>}, {pipeline_mode = #tpu.pipeline_mode<synchronous>, transform_indices = @transform_3, window_bounds = array<i64: 32, 32>}, {pipeline_mode = #tpu.pipeline_mode<synchronous>, transform_indices = @transform_4, window_bounds = array<i64: 1, 32>}, {transform_indices = @transform_5, window_bounds = array<i64: 1>}, {transform_indices = @transform_6, window_bounds = array<i64: 1, 256>}]} {
    %c0 = arith.constant 0 : index
    %c0_0 = arith.constant 0 : index
    %0 = vector.load %arg1[%c0, %c0_0] : memref<256x48xf32, #tpu.memory_space<vmem>>, vector<256x48xf32>
    %c0_1 = arith.constant 0 : index
    %c0_2 = arith.constant 0 : index
    %1 = vector.load %arg2[%c0_1, %c0_2] : memref<32x48xf32, #tpu.memory_space<vmem>>, vector<32x48xf32>
    %cst = arith.constant dense<0.000000e+00> : vector<32x256xf32>
    %2 = tpu.matmul %1, %0, %cst {dimension_numbers = #tpu.dot_dimension_numbers<[1], [1], [0], [0], [0, 0, 1, 0], [], []>, precision = #tpu.contract_precision<fp32>} : vector<32x48xf32>, vector<256x48xf32>, vector<32x256xf32> -> vector<32x256xf32>
    %c0_3 = arith.constant 0 : index
    %c0_4 = arith.constant 0 : index
    %3 = vector.load %arg3[%c0_3, %c0_4] : memref<32x2xf32, #tpu.memory_space<vmem>>, vector<32x1xf32>
    %4 = vector.broadcast %3 : vector<32x1xf32> to vector<32x256xf32>
    %5 = arith.addf %2, %4 : vector<32x256xf32>
    %6 = math.tanh %5 : vector<32x256xf32>
    %c0_5 = arith.constant 0 : index
    %c0_6 = arith.constant 0 : index
    %7 = vector.load %arg4[%c0_5, %c0_6] : memref<32x32xf32, #tpu.memory_space<vmem>>, vector<32x32xf32>
    %cst_7 = arith.constant dense<0.000000e+00> : vector<32x256xf32>
    %8 = tpu.matmul %7, %6, %cst_7 {dimension_numbers = #tpu.dot_dimension_numbers<[1], [0], [0], [1], [0, 0, 1, 1], [], []>, precision = #tpu.contract_precision<fp32>} : vector<32x32xf32>, vector<32x256xf32>, vector<32x256xf32> -> vector<32x256xf32>
    %c0_8 = arith.constant 0 : index
    %c1 = arith.constant 1 : index
    %9 = vector.load %arg3[%c0_8, %c1] : memref<32x2xf32, #tpu.memory_space<vmem>>, vector<32x1xf32>
    %10 = vector.broadcast %9 : vector<32x1xf32> to vector<32x256xf32>
    %11 = arith.addf %8, %10 : vector<32x256xf32>
    %12 = math.tanh %11 : vector<32x256xf32>
    %c0_9 = arith.constant 0 : index
    %c0_10 = arith.constant 0 : index
    %13 = vector.load %arg5[%c0_9, %c0_10] : memref<1x32xf32, #tpu.memory_space<vmem>>, vector<1x32xf32>
    %cst_11 = arith.constant dense<0.000000e+00> : vector<1x256xf32>
    %14 = tpu.matmul %13, %12, %cst_11 {dimension_numbers = #tpu.dot_dimension_numbers<[1], [0], [0], [1], [0, 0, 1, 1], [], []>, precision = #tpu.contract_precision<fp32>} : vector<1x32xf32>, vector<32x256xf32>, vector<1x256xf32> -> vector<1x256xf32>
    %c0_12 = arith.constant 0 : index
    %15 = memref.load %arg6[%c0_12] : memref<1xf32, #tpu.memory_space<smem>>
    %16 = vector.broadcast %15 : f32 to vector<1x256xf32>
    %17 = arith.addf %14, %16 : vector<1x256xf32>
    %c0_13 = arith.constant 0 : index
    %c0_14 = arith.constant 0 : index
    %18 = vector.load %arg7[%c0_13, %c0_14] : memref<1x256xf32, #tpu.memory_space<vmem>>, vector<1x256xf32>
    tpu.vector_store %arg7[%c0_13, %c0_14], %17 {strides = array<i32>} : memref<1x256xf32, #tpu.memory_space<vmem>>, vector<1x256xf32>,
    return
  }
  func.func @transform_0(%arg0: i32) -> (i32, i32) {
    %c0_i32 = arith.constant 0 : i32
    %c0_i32_0 = arith.constant 0 : i32
    return %arg0, %c0_i32 : i32, i32
  }
  func.func @transform_1(%arg0: i32) -> (i32, i32) {
    %c0_i32 = arith.constant 0 : i32
    %c0_i32_0 = arith.constant 0 : i32
    %c0_i32_1 = arith.constant 0 : i32
    return %c0_i32, %c0_i32_0 : i32, i32
  }
  func.func @transform_2(%arg0: i32) -> (i32, i32) {
    %c0_i32 = arith.constant 0 : i32
    %c0_i32_0 = arith.constant 0 : i32
    %c0_i32_1 = arith.constant 0 : i32
    return %c0_i32, %c0_i32_0 : i32, i32
  }
  func.func @transform_3(%arg0: i32) -> (i32, i32) {
    %c0_i32 = arith.constant 0 : i32
    %c0_i32_0 = arith.constant 0 : i32
    %c0_i32_1 = arith.constant 0 : i32
    return %c0_i32, %c0_i32_0 : i32, i32
  }
  func.func @transform_4(%arg0: i32) -> (i32, i32) {
    %c0_i32 = arith.constant 0 : i32
    %c0_i32_0 = arith.constant 0 : i32
    %c0_i32_1 = arith.constant 0 : i32
    return %c0_i32, %c0_i32_0 : i32, i32
  }
  func.func @transform_5(%arg0: i32) -> i32 {
    %c0_i32 = arith.constant 0 : i32
    %c0_i32_0 = arith.constant 0 : i32
    return %c0_i32 : i32
  }
  func.func @transform_6(%arg0: i32) -> (i32, i32) {
    %c0_i32 = arith.constant 0 : i32
    %c0_i32_0 = arith.constant 0 : i32
    return %c0_i32, %arg0 : i32, i32
  }
}

</mosaic_0001>

<bundles_post_ra>
// kernel: tpu_custom_call.1
= control target key start
LH: loop header
LB: loop body
LE: loop exit
PB: predicated region body
PF: predicated region fallthrough
CT: control target
= control target key end

     0   :  { %vm85_vm0 = vcmask 392192   ;;  %s4312_s0 = inlined_call_operand.vmem [shape: f32[256,48], index: 0, kind: input, shape index: {}]   ;;  %s4313_s1 = inlined_call_operand.vmem [shape: f32[32,48], index: 1, kind: input, shape index: {}]   ;;  %s4314_s2 = inlined_call_operand.vmem [shape: f32[32,2], index: 2, kind: input, shape index: {}]   ;;  %s4315_s3 = inlined_call_operand.vmem [shape: f32[32,32], index: 3, kind: input, shape index: {}]   ;;  %s4316_s4 = inlined_call_operand.vmem [shape: f32[1,32], index: 4, kind: input, shape index: {}]   ;;  %s4317_s5 = inlined_call_operand.<no memory space> [shape: f32[1], index: 5, kind: input, shape index: {}]   ;;  %s4318_s6 = inlined_call_operand.hbm [shape: f32[1,256], index: 6, kind: output, shape index: {}]  }
   0x1   :  { %v41_v0 = vld [vmem:[%s4312_s0 + $0x80] sm:$0xff]  ;;  %v42_v1 = vld [vmem:[%s4312_s0 + $0x88] sm:$0xff]  ;;  %v43_v7 = vld [vmem:[%s4312_s0 + $0x90] sm:$0xff] }
   0x2   :  { %v25_v2 = vld [vmem:[%s4312_s0] sm:$0xff]  ;;  %v3272_v3 = vsel %vm85_vm0, %v41_v0, 0  ;;  %v3275_v4 = vsel %vm85_vm0, %v42_v1, 0  ;;  %v26_v5 = vld [vmem:[%s4312_s0 + $0x8] sm:$0xff]  ;;  %v44_v8 = vld [vmem:[%s4312_s0 + $0x98] sm:$0xff]  ;;  %v3303_v16 = vsel %vm85_vm0, %v43_v7, 0 }
   0x3   :  { %v3281_v6 = vsel %vm85_vm0, %v25_v2, 0  ;;  %v4336_v9 = vand.u32 4294901760, %v3272_v3  ;;  %v4335_v10 = vand.u32 4294901760, %v3275_v4  ;;  %v3292_v11 = vsel %vm85_vm0, %v26_v5, 0  ;;  %v27_v13 = vld [vmem:[%s4312_s0 + $0x10] sm:$0xff]  ;;  %v28_v14 = vld [vmem:[%s4312_s0 + $0x18] sm:$0xff] }
   0x4   :  { %v4333_v12 = vand.u32 4294901760, %v3281_v6  ;;  %v4332_v15 = vand.u32 4294901760, %v3292_v11  ;;  %v3306_v17 = vsel %vm85_vm0, %v44_v8, 0  ;;  %v3309_v18 = vsel %vm85_vm0, %v27_v13, 0  ;;  %v45_v27 = vld [vmem:[%s4312_s0 + $0xa0] sm:$0xff]  ;;  %v46_v28 = vld [vmem:[%s4312_s0 + $0xa8] sm:$0xff] }
   0x5   :  { %v3314_v19 = vsub.f32 %v3272_v3, %v4336_v9  ;;  %v3319_v20 = vsub.f32 %v3275_v4, %v4335_v10  ;;  %v4331_v22 = vand.u32 4294901760, %v3303_v16  ;;  %v4330_v24 = vand.u32 4294901760, %v3306_v17  ;;  %v29_v29 = vld [vmem:[%s4312_s0 + $0x20] sm:$0xff]  ;;  %v30_v33 = vld [vmem:[%s4312_s0 + $0x28] sm:$0xff]  ;;  %v47_v37 = vld [vmem:[%s4312_s0 + $0xb0] sm:$0xff] }
   0x6   :  { %v3324_v21 = vsub.f32 %v3281_v6, %v4333_v12  ;;  %v3330_v23 = vsub.f32 %v3292_v11, %v4332_v15  ;;  %v3334_v25 = vsel %vm85_vm0, %v28_v14, 0  ;;  %v4329_v26 = vand.u32 4294901760, %v3309_v18  ;;  %v48_v42 = vld [vmem:[%s4312_s0 + $0xb8] sm:$0xff]  ;;  %v31_v47 = vld [vmem:[%s4312_s0 + $0x30] sm:$0xff]  ;;  %v49_v56 = vld [vmem:[%s4312_s0 + $0xc0] sm:$0xff] }
   0x7   :  { %v2825_v30 = vpack.c.bf16 %v3319_v20, %v3314_v19  ;;  %v3351_v31 = vsub.f32 %v3303_v16, %v4331_v22  ;;  %v4328_v32 = vand.u32 4294901760, %v3334_v25  ;;  %v3362_v35 = vsub.f32 %v3306_v17, %v4330_v24  ;;  %v32_v51 = vld [vmem:[%s4312_s0 + $0x38] sm:$0xff]  ;;  %v50_v59 = vld [vmem:[%s4312_s0 + $0xc8] sm:$0xff] }
   0x8   :  { %v2827_v34 = vpack.c.bf16 %v3330_v23, %v3324_v21  ;;  %v3367_v36 = vsub.f32 %v3309_v18, %v4329_v26  ;;  %v3378_v39 = vsel %vm85_vm0, %v45_v27, 0  ;;  %v3381_v40 = vsel %vm85_vm0, %v46_v28, 0 }
   0x9   :  { %2826 = vmatprep.subr.bf16.mxu0 %v2825_v30  ;;  %v3375_v38 = vsub.f32 %v3334_v25, %v4328_v32  ;;  %v3384_v41 = vsel %vm85_vm0, %v29_v29, 0  ;;  %v2829_v43 = vpack.c.bf16 %v3362_v35, %v3351_v31  ;;  %v4327_v44 = vand.u32 4294901760, %v3378_v39 }
   0xa   :  { %2828 = vmatpush3.bf16.xpose.msra.mxu0 %v2827_v34  ;;  %v4325_v45 = vand.u32 4294901760, %v3381_v40  ;;  %v3394_v46 = vsel %vm85_vm0, %v30_v33, 0  ;;  %v4324_v48 = vand.u32 4294901760, %v3384_v41  ;;  %v3402_v50 = vsel %vm85_vm0, %v47_v37, 0 }
   0xb   :  { %v4323_v49 = vand.u32 4294901760, %v3394_v46  ;;  %2830 = vmatprep.subr.bf16.mxu0 %v2829_v43  ;;  %v3410_v52 = vsub.f32 %v3378_v39, %v4327_v44  ;;  %v3418_v54 = vsel %vm85_vm0, %v48_v42, 0  ;;  %v4322_v55 = vand.u32 4294901760, %v3402_v50 }
   0xc   :  { %v3415_v53 = vsub.f32 %v3381_v40, %v4325_v45  ;;  %v4321_v57 = vand.u32 4294901760, %v3418_v54  ;;  %v3426_v58 = vsel %vm85_vm0, %v31_v47, 0 }
   0xd   :  { %12 = vsyncpa [#allocation4], 0  ;;  %v2831_v60 = vpack.c.bf16 %v3375_v38, %v3367_v36  ;;  %v3434_v61 = vsel %vm85_vm0, %v32_v51, 0  ;;  %v4320_v62 = vand.u32 4294901760, %v3426_v58  ;;  %v3442_v0 = vsub.f32 %v3384_v41, %v4324_v48  ;;  %v33_v5 = vld [vmem:[%s4312_s0 + $0x40] sm:$0xff]  ;;  %v34_v7 = vld [vmem:[%s4312_s0 + $0x48] sm:$0xff] }
   0xe   :  { %v2833_v63 = vpack.c.bf16 %v3415_v53, %v3410_v52  ;;  %v4319_v1 = vand.u32 4294901760, %v3434_v61  ;;  %v3446_v2 = vsel %vm85_vm0, %v49_v56, 0  ;;  %v3457_v8 = vsub.f32 %v3394_v46, %v4323_v49  ;;  %v51_v28 = vld [vmem:[%s4312_s0 + $0xd0] sm:$0xff]  ;;  %v52_v29 = vld [vmem:[%s4312_s0 + $0xd8] sm:$0xff]  ;;  %s3226_s12 = smov [#allocation3]  }
   0xf   :  { %v3462_v13 = vsub.f32 %v3402_v50, %v4322_v55  ;;  %v3467_v14 = vsub.f32 %v3418_v54, %v4321_v57  ;;  %v3470_v27 = vsel %vm85_vm0, %v50_v59, 0  ;;  %v4326_v30 = vand.u32 4294901760, %v3446_v2  ;;  %v35_v33 = vld [vmem:[%s4312_s0 + $0x50] sm:$0xff]  ;;  %v36_v47 = vld [vmem:[%s4312_s0 + $0x58] sm:$0xff]  ;;  %v38_v55 = vld [vmem:[%s4312_s0 + $0x68] sm:$0xff] }
  0x10   :  { %v3485_v34 = vsub.f32 %v3426_v58, %v4320_v62  ;;  %v3490_v37 = vsub.f32 %v3434_v61, %v4319_v1  ;;  %v3493_v42 = vsel %vm85_vm0, %v33_v5, 0  ;;  %v3496_v43 = vsel %vm85_vm0, %v34_v7, 0  ;;  %v55_v44 = vld [vmem:[%s4312_s0 + $0xf0] sm:$0xff] }
  0x11   :  { %v4334_v51 = vand.u32 4294901760, %v3470_v27  ;;  %v3503_v56 = vsel %vm85_vm0, %v51_v28, 0  ;;  %v3506_v59 = vsel %vm85_vm0, %v52_v29, 0  ;;  %v2835_v5 = vpack.c.bf16 %v3457_v8, %v3442_v0  ;;  %v54_v28 = vld [vmem:[%s4312_s0 + $0xe8] sm:$0xff]  ;;  %v37_v29 = vld [vmem:[%s4312_s0 + $0x60] sm:$0xff] }
  0x12   :  { %2832 = vmatpush3.bf16.xpose.msra.mxu0 %v2831_v60  ;;  %4361 = vst [vmem:[#allocation6_spill] sm:$0xff] %v3485_v34  ;;  %4362 = vst [vmem:[#allocation7_spill] sm:$0xff] %v3490_v37  ;;  %v53_v60 = vld [vmem:[%s4312_s0 + $0xe0] sm:$0xff]  ;;  %v2837_v7 = vpack.c.bf16 %v3467_v14, %v3462_v13  ;;  %v3527_v1 = vsub.f32 %v3446_v2, %v4326_v30  ;;  %v4337_v62 = vand.u32 4294901760, %v3493_v42  ;;  %v4338_v57 = vand.u32 4294901760, %v3496_v43 }
  0x13   :  { %2834 = vmatprep.subr.bf16.mxu0 %v2833_v63  ;;  %v3516_v63 = vsel %vm85_vm0, %v35_v33, 0  ;;  %v3532_v33 = vsel %vm85_vm0, %v36_v47, 0  ;;  %v2839_v49 = vpack.c.bf16 %v3490_v37, %v3485_v34  ;;  %v4339_v48 = vand.u32 4294901760, %v3503_v56 }
  0x14   :  { %4363 = vst [vmem:[#allocation8_spill] sm:$0xff] %v3516_v63  ;;  %4364 = vst [vmem:[#allocation9_spill] sm:$0xff] %v3532_v33  ;;  %v4340_v45 = vand.u32 4294901760, %v3506_v59  ;;  %v3542_v30 = vsel %vm85_vm0, %v53_v60, 0  ;;  %v3550_v47 = vsub.f32 %v3470_v27, %v4334_v51  ;;  %v4341_v32 = vand.u32 4294901760, %v3516_v63  ;;  %v56_v60 = vld [vmem:[%s4312_s0 + $0xf8] sm:$0xff] }
  0x15   :  { %4365 = vst [vmem:[#allocation10_spill] sm:$0xff] %v3542_v30  ;;  %v3554_v26 = vsel %vm85_vm0, %v54_v28, 0  ;;  %v3557_v24 = vsel %vm85_vm0, %v37_v29, 0  ;;  %v3566_v51 = vsel %vm85_vm0, %v38_v55, 0  ;;  %v39_v28 = vld [vmem:[%s4312_s0 + $0x70] sm:$0xff]  ;;  %v3574_v29 = vsub.f32 %v3493_v42, %v4337_v62  ;;  %v40_v55 = vld [vmem:[%s4312_s0 + $0x78] sm:$0xff] }
  0x16   :  { %4366 = vst [vmem:[#allocation11_spill] sm:$0xff] %v3554_v26  ;;  %4367 = vst [vmem:[#allocation12_spill] sm:$0xff] %v3557_v24  ;;  %v3579_v10 = vsub.f32 %v3496_v43, %v4338_v57  ;;  %v3583_v12 = vsel %vm85_vm0, %v55_v44, 0  ;;  %v3591_v62 = vsub.f32 %v3503_v56, %v4339_v48  ;;  %v3596_v57 = vsub.f32 %v3506_v59, %v4340_v45  ;;  %v57_v45 = vld [vmem:[%s4313_s1] sm:$0xff]  ;;  %s2513_s0 = sshll.u32 %s3226_s12, 4  ;;  %s2514_s0 = int_to_ptr.vmem [resolvable:$true] %s2513_s0 }
  0x17   :  { %4368 = vst [vmem:[#allocation13_spill] sm:$0xff] %v3566_v51  ;;  %4369 = vst [vmem:[#allocation14_spill] sm:$0xff] %v3583_v12  ;;  %v3600_v44 = vsel %vm85_vm0, %v56_v60, 0  ;;  %v3610_v22 = vsel %vm85_vm0, %v39_v28, 0  ;;  %v4372_v60 = vand.u32 4294901760, %v3532_v33  ;;  %v4373_v9 = vand.u32 4294901760, %v3542_v30  ;;  %p3203_p1 = scmp.lt.s32.totalorder %s2514_s0, %s2514_s0 }
  0x18   :  { %4370 = vst [vmem:[#allocation15_spill] sm:$0xff] %v3600_v44  ;;  %4371 = vst [vmem:[#allocation16_spill] sm:$0xff] %v3610_v22  ;;  %v4374_v15 = vand.u32 4294901760, %v3554_v26  ;;  %v3631_v28 = vsel %vm85_vm0, %v40_v55, 0  ;;  %vm1224_vm1 = vcmask 261120  }
  0x19   :  { %4375 = vst [vmem:[#allocation17_spill] sm:$0xff] %v3631_v28 }
  0x1a   :  { %2836 = vmatpush3.bf16.xpose.msra.mxu0 %v2835_v5  ;;  %v3605_v5 = vsub.f32 %v3516_v63, %v4341_v32  ;;  %v3623_v32 = vsub.f32 %v3542_v30, %v4373_v9  ;;  %v3628_v48 = vsub.f32 %v3554_v26, %v4374_v15  ;;  %v4376_v63 = vand.u32 4294901760, %v3557_v24 }
  0x1b   :  { %2838 = vmatprep.subr.bf16.mxu0 %v2837_v7  ;;  %v3618_v7 = vsub.f32 %v3532_v33, %v4372_v60  ;;  %v4377_v9 = vand.u32 4294901760, %v3272_v3  ;;  %v4378_v30 = vand.u32 4294901760, %v3275_v4  ;;  %v4380_v15 = vand.u32 4294901760, %v3566_v51 }
  0x1c   :  { %v3636_v37 = vsub.f32 %v3557_v24, %v4376_v63  ;;  %v4381_v26 = vand.u32 4294901760, %v3281_v6  ;;  %v4382_v63 = vand.u32 4294901760, %v3292_v11  ;;  %v87_v60 = vsel %vm85_vm0, %v57_v45, 0 }
  0x1d   :  { %v3644_v34 = vpack.c.bf16 %v4378_v30, %v4377_v9  ;;  %v3649_v55 = vsub.f32 %v3566_v51, %v4380_v15  ;;  %v4383_v33 = vand.u32 4294901760, %v3303_v16  ;;  %v4384_v3 = vand.u32 4294901760, %v3306_v17 }
  0x1e   :  { %v3655_v24 = vpack.c.bf16 %v4382_v63, %v4381_v26  ;;  %v2841_v30 = vpack.c.bf16 %v3550_v47, %v3527_v1  ;;  %v4386_v9 = vand.u32 4294901760, %v3583_v12  ;;  %v4387_v6 = vand.u32 4294901760, %v3600_v44 }
  0x1f   :  { %4379 = vst [vmem:[#allocation18_spill] sm:$0xff] %v3644_v34  ;;  %v3662_v4 = vpack.c.bf16 %v4384_v3, %v4383_v33  ;;  %2762 = vmatprep.subr.bf16.mxu1 %v3644_v34  ;;  %v3677_v16 = vand.u32 4294901760, %v87_v60  ;;  %v338_v17 = vand.u32 4294901760, %v3324_v21  ;;  %v345_v26 = vand.u32 4294901760, %v3330_v23 }
  0x20   :  { %v3669_v15 = vsub.f32 %v3583_v12, %v4386_v9  ;;  %v3674_v11 = vsub.f32 %v3600_v44, %v4387_v6  ;;  %2764 = vmatpush3.bf16.xpose.msra.mxu1 %v3655_v24  ;;  %v2843_v45 = vpack.c.bf16 %v3579_v10, %v3574_v29  ;;  %v4389_v33 = vand.u32 4294901760, %v3610_v22 }
  0x21   :  { %4385 = vst [vmem:[#allocation19_spill] sm:$0xff] %v3662_v4  ;;  %4388 = vst [vmem:[#allocation20_spill] sm:$0xff] %v3677_v16  ;;  %v4390_v3 = vand.u32 4294901760, %v3631_v28  ;;  %v3695_v6 = vsub.f32 %v87_v60, %v3677_v16  ;;  %2766 = vmatprep.subr.bf16.mxu1 %v3662_v4  ;;  %v2845_v44 = vpack.c.bf16 %v3596_v57, %v3591_v62  ;;  %v4393_v12 = vand.u32 4294901760, %v3378_v39 }
  0x22   :  { %v3687_v63 = vsub.f32 %v3610_v22, %v4389_v33  ;;  %2840 = vmatpush3.bf16.xpose.msra.mxu0 %v2839_v49  ;;  %v4391_v49 = vand.u32 4294901760, %v3309_v18  ;;  %v4395_v22 = vand.u32 4294901760, %v3384_v41  ;;  %v4397_v60 = vand.u32 4294901760, %v3402_v50 }
  0x23   :  { %v3692_v9 = vsub.f32 %v3631_v28, %v4390_v3  ;;  %2842 = vmatprep.subr.bf16.mxu0 %v2841_v30  ;;  %2633 = vmatprep.mubr.f32.mxu0 %v3695_v6  ;;  %v4392_v3 = vand.u32 4294901760, %v3334_v25  ;;  %v4394_v28 = vand.u32 4294901760, %v3381_v40  ;;  %v4396_v30 = vand.u32 4294901760, %v3394_v46 }
  0x24   :  { %v4398_v18 = vand.u32 4294901760, %v3418_v54  ;;  %v4399_v25 = vand.u32 4294901760, %v3426_v58  ;;  %v4400_v39 = vand.u32 4294901760, %v3434_v61  ;;  %v457_v41 = vand.u32 4294901760, %v3319_v20 }
  0x25   :  { %v3713_v16 = vpack.c.bf16 %v4392_v3, %v4391_v49  ;;  %v3719_v33 = vpack.c.bf16 %v4394_v28, %v4393_v12  ;;  %v3725_v51 = vpack.c.bf16 %v4396_v30, %v4395_v22  ;;  %v3740_v12 = vand.u32 4294901760, %v3695_v6 }
  0x26   :  { %v3731_v4 = vpack.c.bf16 %v4398_v18, %v4397_v60  ;;  %v3737_v49 = vpack.c.bf16 %v4400_v39, %v4399_v25  ;;  %v450_v22 = vand.u32 4294901760, %v3314_v19  ;;  %v339_v46 = vsub.f32 %v3324_v21, %v338_v17 }
  0x27   :  { %v4401_v50 = vand.u32 4294901760, %v3446_v2  ;;  %v4402_v54 = vand.u32 4294901760, %v3470_v27  ;;  %v4403_v61 = vand.u32 4294901760, %v3493_v42  ;;  %v4404_v28 = vand.u32 4294901760, %v3496_v43 }
  0x28   :  { %v294_v3 = vsub.f32 %v3695_v6, %v3740_v12  ;;  %v346_v30 = vsub.f32 %v3330_v23, %v345_v26  ;;  %v4405_v18 = vand.u32 4294901760, %v3503_v56  ;;  %v4406_v21 = vand.u32 4294901760, %v3506_v59  ;;  %2768 = vmatpush3.bf16.xpose.msra.mxu1 %v3713_v16 }
  0x29   :  { %v3751_v58 = vpack.c.bf16 %v4402_v54, %v4401_v50  ;;  %v3757_v60 = vpack.c.bf16 %v4404_v28, %v4403_v61  ;;  %v451_v27 = vsub.f32 %v3314_v19, %v450_v22  ;;  %v458_v25 = vsub.f32 %v3319_v20, %v457_v41  ;;  %2770 = vmatprep.subr.bf16.mxu1 %v3719_v33 }
  0x2a   :  { %v3766_v2 = vpack.c.bf16 %v4406_v21, %v4405_v18  ;;  %v340_v42 = vand.u32 4294901760, %v339_v46  ;;  %v3771_v43 = vand.u32 4294901760, %v294_v3  ;;  %v347_v39 = vand.u32 4294901760, %v346_v30  ;;  %2844 = vmatpush3.bf16.xpose.msra.mxu0 %v2843_v45 }
  0x2b   :  { %v3773_v50 = vpack.c.bf16 %v457_v41, %v450_v22  ;;  %v3775_v54 = vpack.c.bf16 %v345_v26, %v338_v17  ;;  %v452_v23 = vand.u32 4294901760, %v451_v27  ;;  %v459_v56 = vand.u32 4294901760, %v458_v25  ;;  %2846 = vmatprep.subr.bf16.mxu0 %v2845_v44 }
  0x2c   :  { %v464_v59 = vand.u32 4294901760, %v3351_v31  ;;  %v471_v19 = vand.u32 4294901760, %v3362_v35  ;;  %2553 = vmatprep.mubr.f32.mxu1 %v3771_v43  ;;  %v3781_v20 = vpack.c.bf16 %v347_v39, %v340_v42  ;;  %v352_v46 = vand.u32 4294901760, %v3367_v36 }
  0x2d   :  { %v359_v22 = vand.u32 4294901760, %v3375_v38  ;;  %v478_v17 = vand.u32 4294901760, %v3410_v52  ;;  %v3786_v26 = vpack.c.bf16 %v459_v56, %v452_v23  ;;  %v485_v44 = vand.u32 4294901760, %v3415_v53 }
  0x2e   :  { %v465_v41 = vsub.f32 %v3351_v31, %v464_v59  ;;  %v472_v61 = vsub.f32 %v3362_v35, %v471_v19  ;;  %v3790_v28 = vpack.c.bf16 %v471_v19, %v464_v59  ;;  %v353_v45 = vsub.f32 %v3367_v36, %v352_v46 }
  0x2f   :  { %v360_v3 = vsub.f32 %v3375_v38, %v359_v22  ;;  %v3794_v30 = vpack.c.bf16 %v359_v22, %v352_v46  ;;  %v479_v18 = vsub.f32 %v3410_v52, %v478_v17  ;;  %v366_v25 = vand.u32 4294901760, %v3442_v0 }
  0x30   :  { %v466_v21 = vand.u32 4294901760, %v465_v41  ;;  %v473_v27 = vand.u32 4294901760, %v472_v61  ;;  %v354_v42 = vand.u32 4294901760, %v353_v45  ;;  %v373_v35 = vand.u32 4294901760, %v3457_v8  ;;  %2772 = vmatpush3.bf16.xpose.msra.mxu1 %v3725_v51  ;;  %v4407_v61 = vld [vmem:[#allocation6_spill] sm:$0xff] }
  0x31   :  { %v361_v31 = vand.u32 4294901760, %v360_v3  ;;  %v480_v39 = vand.u32 4294901760, %v479_v18  ;;  %v486_v36 = vsub.f32 %v3415_v53, %v485_v44  ;;  %v367_v38 = vsub.f32 %v3442_v0, %v366_v25  ;;  %2774 = vmatprep.subr.bf16.mxu1 %v3731_v4 }
  0x32   :  { %v3800_v23 = vpack.c.bf16 %v473_v27, %v466_v21  ;;  %v3804_v56 = vpack.c.bf16 %v485_v44, %v478_v17  ;;  %v374_v59 = vsub.f32 %v3457_v8, %v373_v35  ;;  %v3810_v19 = vpack.c.bf16 %v373_v35, %v366_v25  ;;  %v4409_v8 = vld [vmem:[#allocation7_spill] sm:$0xff] }
  0x33   :  { %v3807_v52 = vpack.c.bf16 %v361_v31, %v354_v42  ;;  %v492_v46 = vand.u32 4294901760, %v3462_v13  ;;  %v487_v22 = vand.u32 4294901760, %v486_v36  ;;  %v368_v41 = vand.u32 4294901760, %v367_v38 }
  0x34   :  { %v499_v53 = vand.u32 4294901760, %v3467_v14  ;;  %v380_v0 = vand.u32 4294901760, %v4407_v61  ;;  %v4408_v17 = vpack.c.bf16 %v3618_v7, %v3605_v5  ;;  %v375_v45 = vand.u32 4294901760, %v374_v59 }
  0x35   :  { %v493_v3 = vsub.f32 %v3462_v13, %v492_v46  ;;  %v387_v18 = vand.u32 4294901760, %v4409_v8  ;;  %v506_v21 = vand.u32 4294901760, %v3527_v1  ;;  %v4410_v27 = vpack.c.bf16 %v3628_v48, %v3623_v32 }
  0x36   :  { %2848 = vmatpush3.bf16.xpose.msra.mxu0 %v4408_v17  ;;  %v3825_v44 = vpack.c.bf16 %v487_v22, %v480_v39  ;;  %v500_v25 = vsub.f32 %v3467_v14, %v499_v53  ;;  %v381_v42 = vsub.f32 %v4407_v61, %v380_v0  ;;  %v3829_v31 = vpack.c.bf16 %v499_v53, %v492_v46 }
  0x37   :  { %2850 = vmatprep.subr.bf16.mxu0 %v4410_v27  ;;  %v3831_v35 = vpack.c.bf16 %v375_v45, %v368_v41  ;;  %v494_v36 = vand.u32 4294901760, %v493_v3  ;;  %v388_v13 = vsub.f32 %v4409_v8, %v387_v18  ;;  %v3834_v38 = vpack.c.bf16 %v387_v18, %v380_v0 }
  0x38   :  { %v501_v59 = vand.u32 4294901760, %v500_v25  ;;  %v382_v17 = vand.u32 4294901760, %v381_v42  ;;  %v507_v40 = vsub.f32 %v3527_v1, %v506_v21  ;;  %v513_v39 = vand.u32 4294901760, %v3550_v47  ;;  %2776 = vmatpush3.bf16.xpose.msra.mxu1 %v3737_v49 }
  0x39   :  { %v389_v22 = vand.u32 4294901760, %v388_v13  ;;  %v394_v14 = vand.u32 4294901760, %v3574_v29  ;;  %v401_v61 = vand.u32 4294901760, %v3579_v10  ;;  %v520_v46 = vand.u32 4294901760, %v3591_v62  ;;  %2778 = vmatprep.subr.bf16.mxu1 %v3751_v58 }
  0x3a   :  { %v3841_v41 = vpack.c.bf16 %v501_v59, %v494_v36  ;;  %v508_v53 = vand.u32 4294901760, %v507_v40  ;;  %v514_v45 = vsub.f32 %v3550_v47, %v513_v39  ;;  %v3844_v0 = vpack.c.bf16 %v513_v39, %v506_v21 }
  0x3b   :  { %v3847_v3 = vpack.c.bf16 %v389_v22, %v382_v17  ;;  %v395_v1 = vsub.f32 %v3574_v29, %v394_v14  ;;  %v402_v8 = vsub.f32 %v3579_v10, %v401_v61  ;;  %v3851_v18 = vpack.c.bf16 %v401_v61, %v394_v14 }
  0x3c   :  { %v515_v27 = vand.u32 4294901760, %v514_v45  ;;  %v521_v25 = vsub.f32 %v3591_v62, %v520_v46  ;;  %v527_v40 = vand.u32 4294901760, %v3596_v57  ;;  %v408_v47 = vand.u32 4294901760, %v3605_v5  ;;  %v58_v62 = vld [vmem:[%s4313_s1 + $0x8] sm:$0xff] }
  0x3d   :  { %v4411_v21 = vpack.c.bf16 %v3649_v55, %v3636_v37  ;;  %v396_v42 = vand.u32 4294901760, %v395_v1  ;;  %v403_v36 = vand.u32 4294901760, %v402_v8  ;;  %v415_v29 = vand.u32 4294901760, %v3618_v7 }
  0x3e   :  { %v534_v10 = vand.u32 4294901760, %v3623_v32  ;;  %v4412_v13 = vpack.c.bf16 %v3674_v11, %v3669_v15  ;;  %v3868_v59 = vpack.c.bf16 %v515_v27, %v508_v53  ;;  %v522_v17 = vand.u32 4294901760, %v521_v25 }
  0x3f   :  { %2852 = vmatpush3.bf16.xpose.msra.mxu0 %v4411_v21  ;;  %v528_v39 = vsub.f32 %v3596_v57, %v527_v40  ;;  %v409_v22 = vsub.f32 %v3605_v5, %v408_v47  ;;  %v3872_v14 = vpack.c.bf16 %v403_v36, %v396_v42  ;;  %v416_v61 = vsub.f32 %v3618_v7, %v415_v29  ;;  %v59_v57 = vld [vmem:[%s4313_s1 + $0x10] sm:$0xff] }
  0x40   :  { %2854 = vmatprep.subr.bf16.mxu0 %v4412_v13  ;;  %v3875_v45 = vpack.c.bf16 %v527_v40, %v520_v46  ;;  %v3877_v1 = vpack.c.bf16 %v415_v29, %v408_v47  ;;  %v535_v13 = vsub.f32 %v3623_v32, %v534_v10  ;;  %v541_v53 = vand.u32 4294901760, %v3628_v48  ;;  %2780 = vmatpush3.bf16.xpose.msra.mxu1 %v3757_v60 }
  0x41   :  { %v529_v8 = vand.u32 4294901760, %v528_v39  ;;  %v410_v21 = vand.u32 4294901760, %v409_v22  ;;  %v90_v27 = vsel %vm85_vm0, %v58_v62, 0  ;;  %v417_v5 = vand.u32 4294901760, %v416_v61  ;;  %2782 = vmatprep.subr.bf16.mxu1 %v3766_v2 }
  0x42   :  { %v422_v25 = vand.u32 4294901760, %v3636_v37  ;;  %v429_v7 = vand.u32 4294901760, %v3649_v55  ;;  %v536_v40 = vand.u32 4294901760, %v535_v13  ;;  %v542_v47 = vsub.f32 %v3628_v48, %v541_v53  ;;  %v4418_v13 = vld [vmem:[#allocation9_spill] sm:$0xff] }
  0x43   :  { %v3887_v46 = vpack.c.bf16 %v529_v8, %v522_v17  ;;  %v3890_v42 = vpack.c.bf16 %v541_v53, %v534_v10  ;;  %v3893_v32 = vpack.c.bf16 %v417_v5, %v410_v21  ;;  %v93_v62 = vsel %vm85_vm0, %v59_v57, 0 }
  0x44   :  { %v423_v36 = vsub.f32 %v3636_v37, %v422_v25  ;;  %v430_v29 = vsub.f32 %v3649_v55, %v429_v7  ;;  %v543_v39 = vand.u32 4294901760, %v542_v47  ;;  %v3899_v17 = vpack.c.bf16 %v429_v7, %v422_v25  ;;  %v4416_v55 = vld [vmem:[#allocation8_spill] sm:$0xff] }
  0x45   :  { %4413 = vst [vmem:[#allocation6_spill] sm:$0xff] %v3890_v42  ;;  %v548_v22 = vand.u32 4294901760, %v3669_v15  ;;  %v4415_v48 = vpack.c.bf16 %v3692_v9, %v3687_v63  ;;  %v3905_v10 = vand.u32 4294901760, %v90_v27  ;;  %v555_v37 = vand.u32 4294901760, %v3674_v11  ;;  %v60_v47 = vld [vmem:[%s4313_s1 + $0x18] sm:$0xff] }
  0x46   :  { %4414 = vst [vmem:[#allocation7_spill] sm:$0xff] %v3899_v17  ;;  %v424_v61 = vand.u32 4294901760, %v423_v36  ;;  %v431_v8 = vand.u32 4294901760, %v430_v29  ;;  %v4417_v21 = vand.u32 4294901760, %v4416_v55  ;;  %v4419_v53 = vand.u32 4294901760, %v4418_v13 }
  0x47   :  { %2856 = vmatpush3.bf16.xpose.msra.mxu0 %v4415_v48  ;;  %v3915_v5 = vpack.c.bf16 %v543_v39, %v536_v40  ;;  %v549_v25 = vsub.f32 %v3669_v15, %v548_v22  ;;  %v436_v7 = vand.u32 4294901760, %v3687_v63  ;;  %v556_v29 = vsub.f32 %v3674_v11, %v555_v37  ;;  %v4422_v40 = vld [vmem:[#allocation11_spill] sm:$0xff] }
  0x48   :  { %2858 = vmatprep.subr.bf16.mxu0 %v3644_v34  ;;  %v3913_v57 = vpack.c.bf16 %v4419_v53, %v4417_v21  ;;  %v3922_v36 = vpack.c.bf16 %v431_v8, %v424_v61  ;;  %v443_v48 = vand.u32 4294901760, %v3692_v9  ;;  %v3926_v55 = vpack.c.bf16 %v555_v37, %v548_v22  ;;  %v4420_v21 = vld [vmem:[#allocation10_spill] sm:$0xff] }
  0x49   :  { %v4421_v13 = vand.u32 4294901760, %v4420_v21  ;;  %v4423_v39 = vand.u32 4294901760, %v4422_v40  ;;  %v3934_v15 = vand.u32 4294901760, %v93_v62  ;;  %v550_v34 = vand.u32 4294901760, %v549_v25  ;;  %v4424_v25 = vld [vmem:[#allocation19_spill] sm:$0xff] }
  0x4a   :  { %v437_v17 = vsub.f32 %v3687_v63, %v436_v7  ;;  %v303_v61 = vsub.f32 %v90_v27, %v3905_v10  ;;  %v557_v8 = vand.u32 4294901760, %v556_v29  ;;  %v444_v11 = vsub.f32 %v3692_v9, %v443_v48  ;;  %2784 = vmatpush3.bf16.xpose.msra.mxu1 %v3913_v57  ;;  %v4431_v40 = vld [vmem:[#allocation15_spill] sm:$0xff] }
  0x4b   :  { %v3932_v53 = vpack.c.bf16 %v4423_v39, %v4421_v13  ;;  %v3939_v42 = vpack.c.bf16 %v443_v48, %v436_v7  ;;  %v96_v22 = vsel %vm85_vm0, %v60_v47, 0  ;;  %v314_v63 = vsub.f32 %v93_v62, %v3934_v15 }
  0x4c   :  { %v438_v37 = vand.u32 4294901760, %v437_v17  ;;  %v3943_v21 = vpack.c.bf16 %v557_v8, %v550_v34  ;;  %v445_v13 = vand.u32 4294901760, %v444_v11  ;;  %v3949_v9 = vand.u32 4294901760, %v96_v22  ;;  %v4425_v17 = vld [vmem:[#allocation12_spill] sm:$0xff]  ;;  %v4427_v34 = vld [vmem:[#allocation13_spill] sm:$0xff] }
  0x4d   :  { %2786 = vmatprep.subr.bf16.mxu1 %v3932_v53  ;;  %v4426_v7 = vand.u32 4294901760, %v4425_v17  ;;  %v4428_v47 = vand.u32 4294901760, %v4427_v34  ;;  %v4432_v39 = vand.u32 4294901760, %v4431_v40  ;;  %v4433_v11 = vld [vmem:[#allocation16_spill] sm:$0xff]  ;;  %v304_v34 = vand.u32 4294901760, %v303_v61 }
  0x4e   :  { %2634 = vmatmul.mubr.f32.vlgmr.msra.gmra.mrb[0].mxu0 %v3695_v6  ;;  %v3951_v27 = vpack.c.bf16 %v445_v13, %v438_v37  ;;  %v4429_v6 = vld [vmem:[#allocation14_spill] sm:$0xff]  ;;  %v325_v62 = vsub.f32 %v96_v22, %v3949_v9  ;;  %v4434_v37 = vand.u32 4294901760, %v4433_v11  ;;  %v4435_v13 = vld [vmem:[#allocation17_spill] sm:$0xff] }
  0x4f   :  { %2860 = vmatpush3.bf16.xpose.msra.mxu0 %v3655_v24  ;;  %2635 = vmatprep.mubr.f32.mxu0 %v303_v61  ;;  %v3958_v29 = vpack.c.bf16 %v4428_v47, %v4426_v7  ;;  %v4430_v48 = vand.u32 4294901760, %v4429_v6  ;;  %v4436_v17 = vand.u32 4294901760, %v4435_v13  ;;  %v305_v22 = vsub.f32 %v303_v61, %v304_v34 }
  0x50   :  { %2862 = vmatprep.subr.bf16.mxu0 %v4424_v25  ;;  %v315_v47 = vand.u32 4294901760, %v314_v63  ;;  %v326_v40 = vand.u32 4294901760, %v325_v62 }
  0x51   :  { %v3964_v8 = vpack.c.bf16 %v4432_v39, %v4430_v48  ;;  %v3975_v7 = vpack.c.bf16 %v4436_v17, %v4434_v37  ;;  %v306_v6 = vand.u32 4294901760, %v305_v22 }
  0x52   :  { %2636 = vmatmul.mubr.f32.gmra.mrb[2].mxu0 %v303_v61  ;;  %2788 = vmatpush3.bf16.xpose.msra.mxu1 %v3958_v29  ;;  %v316_v48 = vsub.f32 %v314_v63, %v315_v47  ;;  %v327_v11 = vsub.f32 %v325_v62, %v326_v40 }
  0x53   :  { %2637 = vmatprep.mubr.f32.mxu0 %v314_v63  ;;  %2790 = vmatprep.subr.bf16.mxu1 %v3964_v8 }
  0x54   :  { %v317_v39 = vand.u32 4294901760, %v316_v48 }
  0x56   :  { %2638 = vmatmul.mubr.f32.gmra.mrb[4].mxu0 %v314_v63 }
  0x57   :  { %2864 = vmatpush3.bf16.xpose.msra.mxu0 %v3713_v16  ;;  %2639 = vmatprep.mubr.f32.mxu0 %v325_v62 }
  0x58   :  { %2866 = vmatprep.subr.bf16.mxu0 %v3719_v33 }
  0x5a   :  { %2640 = vmatmul.mubr.f32.gmra.mrb[6].mxu0 %v325_v62  ;;  %2792 = vmatpush3.bf16.xpose.msra.mxu1 %v3975_v7 }
  0x5b   :  { %2673 = vmatprep.mubr.f32.mxu0 %v3740_v12  ;;  %2794 = vmatprep.subr.bf16.mxu1 %v3786_v26  ;;  %v328_v26 = vand.u32 4294901760, %v327_v11 }
  0x5f   :  { %2868 = vmatpush3.bf16.xpose.msra.mxu0 %v3725_v51 }
  0x60   :  { %2870 = vmatprep.subr.bf16.mxu0 %v3731_v4 }
  0x61   :  { %2554 = vmatmul.mubr.f32.vlgmr.msra.gmra.mrb[0].mxu1 %v3771_v43  ;;  %v4437_v43 = vld [vmem:[#allocation20_spill] sm:$0xff] }
  0x62   :  { %2796 = vmatpush3.bf16.xpose.msra.mxu1 %v3781_v20  ;;  %2555 = vmatprep.mubr.f32.mxu1 %v306_v6  ;;  %v4029_v20 = vld [vmem:[%s4314_s2 + $0x8] sm:$0xff] }
  0x63   :  { %2798 = vmatprep.subr.bf16.mxu1 %v3800_v23  ;;  %v4439_v23 = vld [vmem:[#allocation7_spill] sm:$0xff] }
  0x65   :  { %2556 = vmatmul.mubr.f32.gmra.mrb[2].mxu1 %v306_v6 }
  0x66   :  { %2557 = vmatprep.mubr.f32.mxu1 %v317_v39 }
  0x67   :  { %2872 = vmatpush3.bf16.xpose.msra.mxu0 %v3737_v49 }
  0x68   :  { %2874 = vmatprep.subr.bf16.mxu0 %v3751_v58 }
  0x69   :  { %2558 = vmatmul.mubr.f32.gmra.mrb[4].mxu1 %v317_v39 }
  0x6a   :  { %2800 = vmatpush3.bf16.xpose.msra.mxu1 %v3807_v52  ;;  %2559 = vmatprep.mubr.f32.mxu1 %v328_v26 }
  0x6b   :  { %2802 = vmatprep.subr.bf16.mxu1 %v3825_v44 }
  0x6d   :  { %2560 = vmatmul.mubr.f32.gmra.mrb[6].mxu1 %v328_v26 }
  0x6e   :  { %2593 = vmatprep.mubr.f32.mxu1 %v4437_v43 }
  0x6f   :  { %2876 = vmatpush3.bf16.xpose.msra.mxu0 %v3757_v60 }
  0x70   :  { %2878 = vmatprep.subr.bf16.mxu0 %v3766_v2 }
  0x72   :  { %2804 = vmatpush3.bf16.xpose.msra.mxu1 %v3831_v35 }
  0x73   :  { %2806 = vmatprep.subr.bf16.mxu1 %v3841_v41 }
  0x77   :  { %2880 = vmatpush3.bf16.xpose.msra.mxu0 %v3913_v57 }
  0x78   :  { %2882 = vmatprep.subr.bf16.mxu0 %v3932_v53 }
  0x7a   :  { %2808 = vmatpush3.bf16.xpose.msra.mxu1 %v3847_v3 }
  0x7b   :  { %2810 = vmatprep.subr.bf16.mxu1 %v3868_v59  ;;  %v1204_v59 = vld [vmem:[%s4315_s3] sm:$0xff] }
  0x7f   :  { %2884 = vmatpush3.bf16.xpose.msra.mxu0 %v3958_v29 }
  0x80   :  { %2886 = vmatprep.subr.bf16.mxu0 %v3964_v8 }
  0x82   :  { %2812 = vmatpush3.bf16.xpose.msra.mxu1 %v3872_v14 }
  0x83   :  { %2814 = vmatprep.subr.bf16.mxu1 %v3887_v46 }
  0x87   :  { %2888 = vmatpush3.bf16.xpose.msra.mxu0 %v3975_v7 }
  0x88   :  { %2890 = vmatprep.subr.bf16.mxu0 %v3773_v50  ;;  %v4021_v50 = vld [vmem:[%s4314_s2 + $0x10] sm:$0xff] }
  0x8a   :  { %2816 = vmatpush3.bf16.xpose.msra.mxu1 %v3893_v32  ;;  %v1226_v32 = vsel %vm1224_vm1, %v1204_v59, 0 }
  0x8b   :  { %2818 = vmatprep.subr.bf16.mxu1 %v3915_v5  ;;  %v1205_v5 = vld [vmem:[%s4315_s3 + $0x8] sm:$0xff] }
  0x8e   :  { %2674 = vmatmul.mubr.f32.vlgmr.msra.gmra.mrb[0].mxu0 %v3740_v12  ;;  %v4016_v12 = vld [vmem:[%s4314_s2] sm:$0xff] }
  0x8f   :  { %2892 = vmatpush3.bf16.xpose.msra.mxu0 %v3775_v54  ;;  %2675 = vmatprep.mubr.f32.mxu0 %v304_v34  ;;  %v3222_v54 = vmov 0  }
  0x90   :  { %2894 = vmatprep.subr.bf16.mxu0 %v3790_v28  ;;  %3162 = vset.pattern.permute.xlu0 %v3222_v54  ;;  %v4035_v28 = vld [vmem:[%s4314_s2 + $0x18] sm:$0xff] }
  0x91   :  { %67 = vperm.xlu0 %3162, %v4016_v12   ;;  %3163 = vset.pattern.permute.xlu1 %v3222_v54 }
  0x92   :  { %2676 = vmatmul.mubr.f32.gmra.mrb[2].mxu0 %v304_v34  ;;  %2820 = vmatpush3.bf16.xpose.msra.mxu1 %v3922_v36 }
  0x93   :  { %2677 = vmatprep.mubr.f32.mxu0 %v315_v47  ;;  %2822 = vmatprep.subr.bf16.mxu1 %v3943_v21 }
  0x94   :  { %77 = vperm.xlu1 %3163, %v4021_v50  }
  0x95   :  { %72 = vperm.xlu0 %3162, %v4029_v20  }
  0x96   :  { %2678 = vmatmul.mubr.f32.gmra.mrb[4].mxu0 %v315_v47  ;;  %v1206_v47 = vld [vmem:[%s4315_s3 + $0x10] sm:$0xff] }
  0x97   :  { %2896 = vmatpush3.bf16.xpose.msra.mxu0 %v3794_v30  ;;  %2679 = vmatprep.mubr.f32.mxu0 %v326_v40  ;;  %v4438_v30 = vld [vmem:[#allocation6_spill] sm:$0xff] }
  0x98   :  { %2898 = vmatprep.subr.bf16.mxu0 %v3804_v56  ;;  %82 = vperm.xlu1 %3163, %v4035_v28   ;;  %v4440_v56 = vld [vmem:[#allocation18_spill] sm:$0xff] }
  0x9a   :  { %2680 = vmatmul.mubr.f32.gmra.mrb[6].mxu0 %v326_v40  ;;  %2824 = vmatpush3.bf16.xpose.msra.mxu1 %v3951_v27 }
  0x9b   :  { %2713 = vmatprep.mubr.f32.mxu0 %v4437_v43 }
  0x9f   :  { %2900 = vmatpush3.bf16.xpose.msra.mxu0 %v3810_v19 }
  0xa0   :  { %2902 = vmatprep.subr.bf16.mxu0 %v3829_v31 }
  0xa1   :  { %2594 = vmatmul.mubr.f32.vlgmr.msra.gmra.mrb[0].mxu1 %v4437_v43 }
  0xa2   :  { %2595 = vmatprep.mubr.f32.mxu1 %v3905_v10 }
  0xa5   :  { %2596 = vmatmul.mubr.f32.gmra.mrb[2].mxu1 %v3905_v10 }
  0xa6   :  { %2597 = vmatprep.mubr.f32.mxu1 %v3934_v15 }
  0xa7   :  { %2904 = vmatpush3.bf16.xpose.msra.mxu0 %v3834_v38  ;;  %v3224_v38 = vmov 1  }
  0xa8   :  { %2906 = vmatprep.subr.bf16.mxu0 %v3844_v0  ;;  %3164 = vset.pattern.permute.xlu0 %v3224_v38 }
  0xa9   :  { %2598 = vmatmul.mubr.f32.gmra.mrb[4].mxu1 %v3934_v15  ;;  %3165 = vset.pattern.permute.xlu1 %v3224_v38 }
  0xaa   :  { %2599 = vmatprep.mubr.f32.mxu1 %v3949_v9  ;;  %1209 = vperm.xlu0 %3164, %v4016_v12  }
  0xab   :  { %1213 = vperm.xlu1 %3165, %v4029_v20   ;;  %v1207_v20 = vld [vmem:[%s4315_s3 + $0x18] sm:$0xff] }
  0xad   :  { %2600 = vmatmul.mubr.f32.gmra.mrb[6].mxu1 %v3949_v9 }
  0xae   :  { %1221 = vperm.xlu0 %3164, %v4035_v28  }
  0xaf   :  { %2908 = vmatpush3.bf16.xpose.msra.mxu0 %v3851_v18  ;;  %1217 = vperm.xlu1 %3165, %v4021_v50  }
  0xb0   :  { %2910 = vmatprep.subr.bf16.mxu0 %v3875_v45 }
  0xb7   :  { %2912 = vmatpush3.bf16.xpose.msra.mxu0 %v3877_v1 }
  0xb8   :  { %2914 = vmatprep.subr.bf16.mxu0 %v4438_v30 }
  0xbf   :  { %2916 = vmatpush3.bf16.xpose.msra.mxu0 %v4439_v23 }
  0xc0   :  { %2918 = vmatprep.subr.bf16.mxu0 %v3926_v55 }
  0xc7   :  { %2920 = vmatpush3.bf16.xpose.msra.mxu0 %v3939_v42 }
  0xc8   :  { %2922 = vmatprep.subr.bf16.mxu0 %v4440_v56 }
  0xce   :  { %2714 = vmatmul.mubr.f32.vlgmr.msra.gmra.mrb[0].mxu0 %v4437_v43 }
  0xcf   :  { %2924 = vmatpush3.bf16.xpose.msra.mxu0 %v3655_v24  ;;  %2715 = vmatprep.mubr.f32.mxu0 %v3905_v10 }
  0xd0   :  { %2926 = vmatprep.subr.bf16.mxu0 %v4424_v25 }
  0xd2   :  { %2716 = vmatmul.mubr.f32.gmra.mrb[2].mxu0 %v3905_v10 }
  0xd3   :  { %2717 = vmatprep.mubr.f32.mxu0 %v3934_v15 }
  0xd6   :  { %2718 = vmatmul.mubr.f32.gmra.mrb[4].mxu0 %v3934_v15 }
  0xd7   :  { %2928 = vmatpush3.bf16.xpose.msra.mxu0 %v3713_v16  ;;  %2719 = vmatprep.mubr.f32.mxu0 %v3949_v9 }
  0xd8   :  { %2930 = vmatprep.subr.bf16.mxu0 %v3719_v33 }
  0xda   :  { %2720 = vmatmul.mubr.f32.gmra.mrb[6].mxu0 %v3949_v9 }
  0xdb   :  { %2753 = vmatprep.mubr.f32.mxu0 %v4437_v43 }
  0xdf   :  { %2932 = vmatpush3.bf16.xpose.msra.mxu0 %v3725_v51 }
  0xe0   :  { %2934 = vmatprep.subr.bf16.mxu0 %v3731_v4 }
  0xe7   :  { %2936 = vmatpush3.bf16.xpose.msra.mxu0 %v3737_v49 }
  0xe8   :  { %2938 = vmatprep.subr.bf16.mxu0 %v3751_v58 }
  0xef   :  { %2940 = vmatpush3.bf16.xpose.msra.mxu0 %v3757_v60  ;;  %v3223_v60 = vmov 0.0  }
  0xf0   :  { %2942 = vmatprep.subr.bf16.mxu0 %v3766_v2  ;;  %1309 = vmatprep.mubr.f32.mxu1 %v3223_v60 }
  0xf7   :  { %2944 = vmatpush3.bf16.xpose.msra.mxu0 %v3913_v57 }
  0xf8   :  { %2946 = vmatprep.subr.bf16.mxu0 %v3932_v53 }
  0xff   :  { %2948 = vmatpush3.bf16.xpose.msra.mxu0 %v3958_v29 }
 0x100   :  { %2950 = vmatprep.subr.bf16.mxu0 %v3964_v8 }
 0x107   :  { %2952 = vmatpush3.bf16.xpose.msra.mxu0 %v3975_v7 }
 0x10e   :  { %2754 = vmatmul.mubr.f32.vlgmr.msra.gmra.mrb[0].mxu0 %v4437_v43  ;;  %v1232_v43 = vsel %vm1224_vm1, %v1206_v47, 0 }
 0x10f   :  { %2755 = vmatprep.mubr.f32.mxu0 %v3905_v10 }
 0x110   :  { %v68_v52 = vpop.permute.xlu0 %67 }
 0x112   :  { %2756 = vmatmul.mubr.f32.gmra.mrb[2].mxu0 %v3905_v10 }
 0x113   :  { %2757 = vmatprep.mubr.f32.mxu0 %v3934_v15  ;;  %v78_v3 = vpop.permute.xlu1 %77 }
 0x114   :  { %v73_v31 = vpop.permute.xlu0 %72 }
 0x116   :  { %2758 = vmatmul.mubr.f32.gmra.mrb[4].mxu0 %v3934_v15  ;;  %v4101_v15 = vand.u32 4294901760, %v1226_v32 }
 0x117   :  { %2759 = vmatprep.mubr.f32.mxu0 %v3949_v9  ;;  %v83_v55 = vpop.permute.xlu1 %82 }
 0x118   :  { %v4105_v8 = vsub.f32 %v1226_v32, %v4101_v15 }
 0x11a   :  { %2760 = vmatmul.mubr.f32.gmra.mrb[6].mxu0 %v3949_v9  ;;  %v1229_v9 = vsel %vm1224_vm1, %v1205_v5, 0  ;;  %v1312_v40 = vand.u32 4294901760, %v4105_v8 }
 0x11b   :  { %2013 = vmatprep.mubr.f32.mxu0 %v3223_v60  ;;  %v4107_v17 = vand.u32 4294901760, %v1229_v9 }
 0x11d   :  { %v4118_v26 = vsub.f32 %v1229_v9, %v4107_v17 }
 0x174   :  { %v562_v24 = vpop.f32.mrb[0].mxu1 }
 0x175   :  { %v564_v51 = vpop.f32.mrb[1].mxu1  ;;  %v3049_v19 = vadd.f32 %v562_v24, %v68_v52  ;;  %v1313_v24 = vsub.f32 %v4105_v8, %v1312_v40 }
 0x176   :  { %v3051_v44 = vadd.f32 %v564_v51, %v68_v52  ;;  %v4133_v51 = vand.u32 4294901760, %v1232_v43 }
 0x178   :  { %v569_v4 = vpop.f32.mrb[2].mxu1  ;;  %v4155_v59 = vsub.f32 %v1232_v43, %v4133_v51 }
 0x179   :  { %v571_v16 = vpop.f32.mrb[3].mxu1  ;;  %v3053_v14 = vadd.f32 %v569_v4, %v73_v31 }
 0x17a   :  { %v3055_v45 = vadd.f32 %v571_v16, %v73_v31  ;;  %v1334_v47 = vand.u32 4294901760, %v4155_v59 }
 0x17c   :  { %v576_v33 = vpop.f32.mrb[4].mxu1 }
 0x17d   :  { %v578_v49 = vpop.f32.mrb[5].mxu1  ;;  %v3057_v57 = vadd.f32 %v576_v33, %v78_v3 }
 0x17e   :  { %v3059_v36 = vadd.f32 %v578_v49, %v78_v3  ;;  %v1323_v49 = vand.u32 4294901760, %v4118_v26 }
 0x180   :  { %v583_v58 = vpop.f32.mrb[6].mxu1 }
 0x181   :  { %v585_v2 = vpop.f32.mrb[7].mxu1  ;;  %v3061_v27 = vadd.f32 %v583_v58, %v83_v55  ;;  %v1235_v58 = vsel %vm1224_vm1, %v1207_v20, 0 }
 0x182   :  { %v3063_v25 = vadd.f32 %v585_v2, %v83_v55 }
 0x1e1   :  { %v1170_v35 = vpop.f32.mrb[0].mxu0 }
 0x1e2   :  { %v3050_v41 = vadd.f32 %v3049_v19, %v1170_v35  ;;  %v1172_v0 = vpop.f32.mrb[1].mxu0 }
 0x1e3   :  { %v3052_v18 = vadd.f32 %v3051_v44, %v1172_v0 }
 0x1e4   :  { %3166 = vtanh.f32 %v3050_v41 }
 0x1e5   :  { %3168 = vtanh.f32 %v3052_v18  ;;  %v1177_v1 = vpop.f32.mrb[2].mxu0 }
 0x1e6   :  { %v3054_v46 = vadd.f32 %v3053_v14, %v1177_v1  ;;  %v1179_v42 = vpop.f32.mrb[3].mxu0 }
 0x1e7   :  { %v3056_v10 = vadd.f32 %v3055_v45, %v1179_v42  ;;  %v4162_v42 = vand.u32 4294901760, %v1235_v58 }
 0x1e8   :  { %3170 = vtanh.f32 %v3054_v46 }
 0x1e9   :  { %3172 = vtanh.f32 %v3056_v10  ;;  %v1184_v53 = vpop.f32.mrb[4].mxu0  ;;  %v4181_v43 = vsub.f32 %v1235_v58, %v4162_v42  ;;  %v1335_v58 = vsub.f32 %v4155_v59, %v1334_v47 }
 0x1ea   :  { %v3058_v61 = vadd.f32 %v3057_v57, %v1184_v53  ;;  %v1186_v21 = vpop.f32.mrb[5].mxu0 }
 0x1eb   :  { %v3060_v63 = vadd.f32 %v3059_v36, %v1186_v21 }
 0x1ec   :  { %3174 = vtanh.f32 %v3058_v61 }
 0x1ed   :  { %3176 = vtanh.f32 %v3060_v63  ;;  %v1191_v29 = vpop.f32.mrb[6].mxu0 }
 0x1ee   :  { %v3167_v62 = vpop.eup %3166  ;;  %v3062_v37 = vadd.f32 %v3061_v27, %v1191_v29  ;;  %v1193_v13 = vpop.f32.mrb[7].mxu0 }
 0x1ef   :  { %v3169_v7 = vpop.eup %3168  ;;  %v3064_v34 = vadd.f32 %v3063_v25, %v1193_v13  ;;  %v1239_v22 = vand.u32 4294901760, %v3167_v62  ;;  %v1314_v25 = vand.u32 4294901760, %v1313_v24 }
 0x1f0   :  { %3178 = vtanh.f32 %v3062_v37  ;;  %v1237_v6 = vand.u32 4294901760, %v3169_v7 }
 0x1f1   :  { %3180 = vtanh.f32 %v3064_v34  ;;  %v4112_v48 = vsub.f32 %v3167_v62, %v1239_v22 }
 0x1f2   :  { %v3171_v39 = vpop.eup %3170  ;;  %v4115_v11 = vsub.f32 %v3169_v7, %v1237_v6  ;;  %v1324_v7 = vsub.f32 %v4118_v26, %v1323_v49 }
 0x1f3   :  { %v3173_v12 = vpop.eup %3172  ;;  %v1243_v50 = vand.u32 4294901760, %v3171_v39  ;;  %v1362_v54 = vand.u32 4294901760, %v4112_v48 }
 0x1f4   :  { %v1241_v28 = vand.u32 4294901760, %v3173_v12  ;;  %v1356_v30 = vand.u32 4294901760, %v4115_v11 }
 0x1f5   :  { %v4126_v23 = vpack.c.bf16 %v1243_v50, %v1239_v22  ;;  %v4128_v56 = vsub.f32 %v3171_v39, %v1243_v50  ;;  %v1363_v19 = vsub.f32 %v4112_v48, %v1362_v54 }
 0x1f6   :  { %v3175_v4 = vpop.eup %3174  ;;  %v4135_v16 = vpack.c.bf16 %v1241_v28, %v1237_v6  ;;  %v4137_v33 = vsub.f32 %v3173_v12, %v1241_v28  ;;  %v1357_v38 = vsub.f32 %v4115_v11, %v1356_v30 }
 0x1f7   :  { %v3177_v2 = vpop.eup %3176  ;;  %v1247_v52 = vand.u32 4294901760, %v3175_v4  ;;  %v1374_v44 = vand.u32 4294901760, %v4128_v56  ;;  %v2971_v31 = vpack.c.bf16 %v4128_v56, %v4112_v48  ;;  %v1364_v5 = vand.u32 4294901760, %v1363_v19 }
 0x1f8   :  { %2954 = vmatprep.subr.bf16.mxu1 %v4135_v16  ;;  %v1245_v35 = vand.u32 4294901760, %v3177_v2  ;;  %v1368_v41 = vand.u32 4294901760, %v4137_v33  ;;  %v2969_v0 = vpack.c.bf16 %v4137_v33, %v4115_v11  ;;  %v1358_v61 = vand.u32 4294901760, %v1357_v38 }
 0x1f9   :  { %2956 = vmatpush1.bf16.msra.mxu1 %v4126_v23  ;;  %v4151_v3 = vsub.f32 %v3175_v4, %v1247_v52  ;;  %v1375_v18 = vsub.f32 %v4128_v56, %v1374_v44  ;;  %v4157_v14 = vpack.c.bf16 %v1374_v44, %v1362_v54 }
 0x1fa   :  { %v3179_v45 = vpop.eup %3178  ;;  %v4159_v1 = vsub.f32 %v3177_v2, %v1245_v35  ;;  %v1369_v46 = vsub.f32 %v4137_v33, %v1368_v41  ;;  %v4164_v32 = vpack.c.bf16 %v1368_v41, %v1356_v30  ;;  %v1325_v30 = vand.u32 4294901760, %v1324_v7 }
 0x1fb   :  { %v3181_v10 = vpop.eup %3180  ;;  %v1251_v57 = vand.u32 4294901760, %v3179_v45  ;;  %v1376_v36 = vand.u32 4294901760, %v1375_v18  ;;  %v1386_v55 = vand.u32 4294901760, %v4151_v3 }
 0x1fc   :  { %v1249_v53 = vand.u32 4294901760, %v3181_v10  ;;  %v1370_v21 = vand.u32 4294901760, %v1369_v46  ;;  %v1380_v63 = vand.u32 4294901760, %v4159_v1 }
 0x1fd   :  { %v4168_v9 = vpack.c.bf16 %v1251_v57, %v1247_v52  ;;  %v1397_v27 = vsub.f32 %v3179_v45, %v1251_v57  ;;  %v2963_v29 = vpack.c.bf16 %v1376_v36, %v1364_v5  ;;  %v1387_v34 = vsub.f32 %v4151_v3, %v1386_v55 }
 0x1fe   :  { %v4170_v62 = vpack.c.bf16 %v1249_v53, %v1245_v35  ;;  %v1391_v37 = vsub.f32 %v3181_v10, %v1249_v53  ;;  %v2961_v13 = vpack.c.bf16 %v1370_v21, %v1358_v61  ;;  %v1381_v39 = vsub.f32 %v4159_v1, %v1380_v63 }
 0x1ff   :  { %v1398_v22 = vand.u32 4294901760, %v1397_v27  ;;  %v2975_v6 = vpack.c.bf16 %v1397_v27, %v4151_v3  ;;  %v1388_v24 = vand.u32 4294901760, %v1387_v34  ;;  %v1345_v52 = vand.u32 4294901760, %v4181_v43 }
 0x200   :  { %2958 = vmatprep.subr.bf16.mxu1 %v4170_v62  ;;  %v1392_v11 = vand.u32 4294901760, %v1391_v37  ;;  %v2973_v12 = vpack.c.bf16 %v1391_v37, %v4159_v1  ;;  %v1382_v33 = vand.u32 4294901760, %v1381_v39  ;;  %v1336_v35 = vand.u32 4294901760, %v1335_v58 }
 0x201   :  { %2960 = vmatpush1.bf16.msra.mxu1 %v4168_v9  ;;  %v1399_v50 = vsub.f32 %v1397_v27, %v1398_v22  ;;  %v2991_v54 = vpack.c.bf16 %v1398_v22, %v1386_v55  ;;  %v1346_v38 = vsub.f32 %v4181_v43, %v1345_v52 }
 0x202   :  { %2962 = vmatprep.subr.bf16.mxu1 %v2961_v13  ;;  %v1393_v20 = vsub.f32 %v1391_v37, %v1392_v11  ;;  %v2989_v28 = vpack.c.bf16 %v1392_v11, %v1380_v63 }
 0x203   :  { %v1400_v4 = vand.u32 4294901760, %v1399_v50  ;;  %v1347_v41 = vand.u32 4294901760, %v1346_v38 }
 0x204   :  { %1315 = vmatmul.mubr.f32.vlgmr.msra.gmra.mrb[8].mxu1 %v1314_v25  ;;  %v1394_v2 = vand.u32 4294901760, %v1393_v20 }
 0x205   :  { %2964 = vmatpush1.bf16.msra.mxu1 %v2963_v29  ;;  %1320 = vmatprep.mubr.f32.mxu1 %v3223_v60  ;;  %v2967_v19 = vpack.c.bf16 %v1400_v4, %v1388_v24 }
 0x206   :  { %v2965_v44 = vpack.c.bf16 %v1394_v2, %v1382_v33 }
 0x208   :  { %1326 = vmatmul.mubr.f32.gmra.mrb[10].mxu1 %v1325_v30  ;;  %2966 = vmatprep.subr.bf16.mxu1 %v2965_v44 }
 0x209   :  { %2968 = vmatpush1.bf16.msra.mxu1 %v2967_v19  ;;  %1331 = vmatprep.mubr.f32.mxu1 %v3223_v60 }
 0x20a   :  { %2970 = vmatprep.subr.bf16.mxu1 %v2969_v0 }
 0x20c   :  { %1337 = vmatmul.mubr.f32.gmra.mrb[12].mxu1 %v1336_v35 }
 0x20d   :  { %1342 = vmatprep.mubr.f32.mxu1 %v3223_v60 }
 0x210   :  { %1348 = vmatmul.mubr.f32.gmra.mrb[14].mxu1 %v1347_v41 }
 0x211   :  { %1458 = vmatprep.mubr.f32.mxu1 %v3223_v60 }
 0x214   :  { %1460 = vmatmul.mubr.f32.vlgmr.msra.gmra.mrb[8].mxu1 %v4101_v15 }
 0x215   :  { %2972 = vmatpush1.bf16.msra.mxu1 %v2971_v31  ;;  %1465 = vmatprep.mubr.f32.mxu1 %v3223_v60 }
 0x216   :  { %2974 = vmatprep.subr.bf16.mxu1 %v2973_v12 }
 0x218   :  { %1467 = vmatmul.mubr.f32.gmra.mrb[10].mxu1 %v4107_v17 }
 0x219   :  { %2976 = vmatpush1.bf16.msra.mxu1 %v2975_v6  ;;  %1472 = vmatprep.mubr.f32.mxu1 %v3223_v60 }
 0x21a   :  { %2978 = vmatprep.subr.bf16.mxu1 %v4135_v16 }
 0x21c   :  { %1474 = vmatmul.mubr.f32.gmra.mrb[12].mxu1 %v4133_v51 }
 0x21d   :  { %1479 = vmatprep.mubr.f32.mxu1 %v3223_v60 }
 0x220   :  { %1481 = vmatmul.mubr.f32.gmra.mrb[14].mxu1 %v4162_v42 }
 0x221   :  { %1567 = vmatprep.mubr.f32.mxu1 %v3223_v60 }
 0x224   :  { %1570 = vmatmul.mubr.f32.vlgmr.msra.gmra.mrb[8].mxu1 %v4105_v8  ;;  %v1210_v8 = vpop.permute.xlu0 %1209 }
 0x225   :  { %2980 = vmatpush1.bf16.msra.mxu1 %v4126_v23  ;;  %1575 = vmatprep.mubr.f32.mxu1 %v3223_v60 }
 0x226   :  { %2982 = vmatprep.subr.bf16.mxu1 %v4170_v62 }
 0x228   :  { %1578 = vmatmul.mubr.f32.gmra.mrb[10].mxu1 %v4118_v26 }
 0x229   :  { %2984 = vmatpush1.bf16.msra.mxu1 %v4168_v9  ;;  %1583 = vmatprep.mubr.f32.mxu1 %v3223_v60 }
 0x22a   :  { %2986 = vmatprep.subr.bf16.mxu1 %v4164_v32 }
 0x22c   :  { %1586 = vmatmul.mubr.f32.gmra.mrb[12].mxu1 %v4155_v59  ;;  %v1935_v59 = vld [vmem:[%s4316_s4] sm:$0x1] }
 0x22d   :  { %1591 = vmatprep.mubr.f32.mxu1 %v3223_v60  ;;  %v1939_v5 = vsel %vm1224_vm1, %v1935_v59, 0 }
 0x22e   :  { %v4257_v21 = vand.u32 4294901760, %v1939_v5 }
 0x230   :  { %1594 = vmatmul.mubr.f32.gmra.mrb[14].mxu1 %v4181_v43 }
 0x231   :  { %1672 = vmatprep.mubr.f32.mxu1 %v3223_v60 }
 0x234   :  { %1676 = vmatmul.mubr.f32.vlgmr.msra.gmra.mrb[8].mxu1 %v1312_v40  ;;  %v1214_v40 = vpop.permute.xlu1 %1213 }
 0x235   :  { %2988 = vmatpush1.bf16.msra.mxu1 %v4157_v14  ;;  %1681 = vmatprep.mubr.f32.mxu1 %v3223_v60  ;;  %v1222_v14 = vpop.permute.xlu0 %1221 }
 0x236   :  { %2990 = vmatprep.subr.bf16.mxu1 %v2989_v28 }
 0x238   :  { %1685 = vmatmul.mubr.f32.gmra.mrb[10].mxu1 %v1323_v49  ;;  %v1218_v49 = vpop.permute.xlu1 %1217 }
 0x239   :  { %2992 = vmatpush1.bf16.msra.mxu1 %v2991_v54  ;;  %1690 = vmatprep.mubr.f32.mxu1 %v3223_v60 }
 0x23a   :  { %2994 = vmatprep.subr.bf16.mxu1 %v4135_v16 }
 0x23c   :  { %1694 = vmatmul.mubr.f32.gmra.mrb[12].mxu1 %v1334_v47 }
 0x23d   :  { %1699 = vmatprep.mubr.f32.mxu1 %v3223_v60 }
 0x240   :  { %1703 = vmatmul.mubr.f32.gmra.mrb[14].mxu1 %v1345_v52 }
 0x241   :  { %1797 = vmatprep.mubr.f32.mxu1 %v3223_v60 }
 0x244   :  { %1799 = vmatmul.mubr.f32.vlgmr.msra.gmra.mrb[8].mxu1 %v4101_v15 }
 0x245   :  { %2996 = vmatpush1.bf16.msra.mxu1 %v4126_v23  ;;  %1804 = vmatprep.mubr.f32.mxu1 %v3223_v60 }
 0x246   :  { %2998 = vmatprep.subr.bf16.mxu1 %v4170_v62  ;;  %v4262_v62 = vsub.f32 %v1939_v5, %v4257_v21 }
 0x248   :  { %1806 = vmatmul.mubr.f32.gmra.mrb[10].mxu1 %v4107_v17  ;;  %v2016_v47 = vand.u32 4294901760, %v4262_v62 }
 0x249   :  { %3000 = vmatpush1.bf16.msra.mxu1 %v4168_v9  ;;  %1811 = vmatprep.mubr.f32.mxu1 %v3223_v60 }
 0x24a   :  { %v2017_v19 = vsub.f32 %v4262_v62, %v2016_v47 }
 0x24c   :  { %1813 = vmatmul.mubr.f32.gmra.mrb[12].mxu1 %v4133_v51 }
 0x24d   :  { %1818 = vmatprep.mubr.f32.mxu1 %v3223_v60 }
 0x250   :  { %1820 = vmatmul.mubr.f32.gmra.mrb[14].mxu1 %v4162_v42 }
 0x251   :  { %1898 = vmatprep.mubr.f32.mxu1 %v3223_v60 }
 0x254   :  { %1900 = vmatmul.mubr.f32.vlgmr.msra.gmra.mrb[8].mxu1 %v4101_v15 }
 0x255   :  { %1905 = vmatprep.mubr.f32.mxu1 %v3223_v60 }
 0x258   :  { %1907 = vmatmul.mubr.f32.gmra.mrb[10].mxu1 %v4107_v17 }
 0x259   :  { %1912 = vmatprep.mubr.f32.mxu1 %v3223_v60 }
 0x25c   :  { %1914 = vmatmul.mubr.f32.gmra.mrb[12].mxu1 %v4133_v51 }
 0x25d   :  { %1919 = vmatprep.mubr.f32.mxu1 %v3223_v60 }
 0x260   :  { %1921 = vmatmul.mubr.f32.gmra.mrb[14].mxu1 %v4162_v42 }
 0x261   :  { %2129 = vmatprep.mubr.f32.mxu1 %v3223_v60 }
 0x327   :  { %v1901_v48 = vpop.f32.mrb[8].mxu1 }
 0x328   :  { %v3065_v26 = vadd.f32 %v1901_v48, %v1210_v8  ;;  %v1903_v23 = vpop.f32.mrb[9].mxu1 }
 0x329   :  { %v3066_v15 = vadd.f32 %v1903_v23, %v1210_v8 }
 0x32a   :  { %3182 = vtanh.f32 %v3065_v26 }
 0x32b   :  { %3184 = vtanh.f32 %v3066_v15  ;;  %v1908_v56 = vpop.f32.mrb[10].mxu1 }
 0x32c   :  { %v3067_v17 = vadd.f32 %v1908_v56, %v1214_v40  ;;  %v1910_v16 = vpop.f32.mrb[11].mxu1 }
 0x32d   :  { %v3068_v31 = vadd.f32 %v1910_v16, %v1214_v40 }
 0x32e   :  { %3186 = vtanh.f32 %v3067_v17 }
 0x32f   :  { %3188 = vtanh.f32 %v3068_v31  ;;  %v1915_v51 = vpop.f32.mrb[12].mxu1 }
 0x330   :  { %v3069_v0 = vadd.f32 %v1915_v51, %v1218_v49  ;;  %v1917_v3 = vpop.f32.mrb[13].mxu1 }
 0x331   :  { %v3070_v18 = vadd.f32 %v1917_v3, %v1218_v49 }
 0x332   :  { %3190 = vtanh.f32 %v3069_v0 }
 0x333   :  { %3192 = vtanh.f32 %v3070_v18  ;;  %v1922_v45 = vpop.f32.mrb[14].mxu1 }
 0x334   :  { %v3183_v1 = vpop.eup %3182  ;;  %v3071_v46 = vadd.f32 %v1922_v45, %v1222_v14  ;;  %v1924_v42 = vpop.f32.mrb[15].mxu1  ;;  %v2018_v45 = vand.u32 4294901760, %v2017_v19 }
 0x335   :  { %v3185_v32 = vpop.eup %3184  ;;  %v3072_v10 = vadd.f32 %v1924_v42, %v1222_v14  ;;  %v1943_v57 = vand.u32 4294901760, %v3183_v1 }
 0x336   :  { %3194 = vtanh.f32 %v3071_v46  ;;  %v1941_v36 = vand.u32 4294901760, %v3185_v32 }
 0x337   :  { %3196 = vtanh.f32 %v3072_v10  ;;  %v4253_v55 = vsub.f32 %v3183_v1, %v1943_v57 }
 0x338   :  { %v3187_v53 = vpop.eup %3186  ;;  %v4255_v61 = vsub.f32 %v3185_v32, %v1941_v36 }
 0x339   :  { %v3189_v63 = vpop.eup %3188  ;;  %v1947_v9 = vand.u32 4294901760, %v3187_v53  ;;  %v2033_v27 = vand.u32 4294901760, %v4253_v55 }
 0x33a   :  { %v1945_v25 = vand.u32 4294901760, %v3189_v63  ;;  %v2027_v29 = vand.u32 4294901760, %v4255_v61 }
 0x33b   :  { %v4264_v37 = vpack.c.bf16 %v1947_v9, %v1943_v57  ;;  %v4266_v13 = vsub.f32 %v3187_v53, %v1947_v9  ;;  %v2034_v11 = vsub.f32 %v4253_v55, %v2033_v27  ;;  %v1937_v9 = vstv %s4317_s5  ;;  %s3198_s5 = scalar_lea.vmem %s2514_s0, 32 }
 0x33c   :  { %v3191_v7 = vpop.eup %3190  ;;  %v4268_v34 = vpack.c.bf16 %v1945_v25, %v1941_v36  ;;  %v2038_v22 = vsub.f32 %v3189_v63, %v1945_v25  ;;  %v2028_v54 = vsub.f32 %v4255_v61, %v2027_v29  ;;  %p3199_p0 = scmp.ne.s32.totalorder %s2514_s0, %s3198_s5  ;;  %p3204_p2 = scmp.lt.s32.totalorder %s3198_s5, %s3198_s5 }
 0x33d   :  { %v3193_v6 = vpop.eup %3192  ;;  %v1951_v39 = vand.u32 4294901760, %v3191_v7  ;;  %v2045_v43 = vand.u32 4294901760, %v4266_v13  ;;  %v3019_v12 = vpack.c.bf16 %v4266_v13, %v4253_v55  ;;  %v2035_v38 = vand.u32 4294901760, %v2034_v11 }
 0x33e   :  { %3002 = vmatprep.subr.bf16.mxu0 %v4268_v34  ;;  %v1949_v50 = vand.u32 4294901760, %v3193_v6  ;;  %v2039_v20 = vand.u32 4294901760, %v2038_v22  ;;  %v3017_v28 = vpack.c.bf16 %v2038_v22, %v4255_v61  ;;  %v2029_v40 = vand.u32 4294901760, %v2028_v54  ;;  %p3205_p3 = por %p3204_p2, %p3203_p1 }
 0x33f   :  { %3004 = vmatpush1.bf16.msra.mxu0 %v4264_v37  ;;  %v2056_v30 = vsub.f32 %v3191_v7, %v1951_v39  ;;  %v2046_v24 = vsub.f32 %v4266_v13, %v2045_v43  ;;  %v3035_v4 = vpack.c.bf16 %v2045_v43, %v2033_v27  ;;  %v3225_v27 = vmov 1966171168  }
 0x340   :  { %v3195_v33 = vpop.eup %3194  ;;  %v2050_v2 = vsub.f32 %v3193_v6, %v1949_v50  ;;  %v2040_v58 = vsub.f32 %v2038_v22, %v2039_v20  ;;  %v3033_v52 = vpack.c.bf16 %v2039_v20, %v2027_v29  ;;  %v2488_v25 = vunpack.c.l.s4 %v3225_v27  ;;  %p3206_p4 = pnand %p3205_p3, %p3199_p0 }
 0x341   :  { %v3197_v44 = vpop.eup %3196  ;;  %v1955_v35 = vand.u32 4294901760, %v3195_v33  ;;  %v2047_v41 = vand.u32 4294901760, %v2046_v24  ;;  %v2057_v8 = vand.u32 4294901760, %v2056_v30  ;;  %v2490_v29 = vlaneseq }
 0x342   :  { %v1953_v48 = vand.u32 4294901760, %v3197_v44  ;;  %v2041_v26 = vand.u32 4294901760, %v2040_v58  ;;  %v2051_v23 = vand.u32 4294901760, %v2050_v2  ;;  %v2489_v7 = vunpack.c.0.s8 %v2488_v25 }
 0x343   :  { %v3007_v15 = vpack.c.bf16 %v1955_v35, %v1951_v39  ;;  %v2068_v56 = vsub.f32 %v3195_v33, %v1955_v35  ;;  %v3011_v17 = vpack.c.bf16 %v2047_v41, %v2035_v38  ;;  %v2058_v51 = vsub.f32 %v2056_v30, %v2057_v8 }
 0x344   :  { %v3005_v16 = vpack.c.bf16 %v1953_v48, %v1949_v50  ;;  %v2062_v49 = vsub.f32 %v3197_v44, %v1953_v48  ;;  %v3009_v31 = vpack.c.bf16 %v2041_v26, %v2029_v40  ;;  %v2052_v18 = vsub.f32 %v2050_v2, %v2051_v23 }
 0x345   :  { %v2069_v0 = vand.u32 4294901760, %v2068_v56  ;;  %v3023_v3 = vpack.c.bf16 %v2068_v56, %v2056_v30  ;;  %v2059_v10 = vand.u32 4294901760, %v2058_v51  ;;  %vm2504_vm2 = vcmp.lt.s32.totalorder %v2490_v29, 256 }
 0x346   :  { %3006 = vmatprep.subr.bf16.mxu0 %v3005_v16  ;;  %3010 = vmatprep.subr.bf16.mxu1 %v3009_v31  ;;  %v2063_v59 = vand.u32 4294901760, %v2062_v49  ;;  %v3021_v14 = vpack.c.bf16 %v2062_v49, %v2050_v2  ;;  %v2053_v5 = vand.u32 4294901760, %v2052_v18 }
 0x347   :  { %3008 = vmatpush1.bf16.msra.mxu0 %v3007_v15  ;;  %3012 = vmatpush1.bf16.msra.mxu1 %v3011_v17  ;;  %v2070_v1 = vsub.f32 %v2068_v56, %v2069_v0  ;;  %v3039_v46 = vpack.c.bf16 %v2069_v0, %v2057_v8 }
 0x348   :  { %v2064_v42 = vsub.f32 %v2062_v49, %v2063_v59  ;;  %v3037_v32 = vpack.c.bf16 %v2063_v59, %v2051_v23 }
 0x349   :  { %v2071_v57 = vand.u32 4294901760, %v2070_v1 }
 0x34a   :  { %v2065_v36 = vand.u32 4294901760, %v2064_v42  ;;  %2019 = vmatmul.mubr.f32.vlgmr.msra.gmra.mrb[8].mxu0 %v2018_v45 }
 0x34b   :  { %v3015_v55 = vpack.c.bf16 %v2071_v57, %v2059_v10 }
 0x34c   :  { %v3013_v53 = vpack.c.bf16 %v2065_v36, %v2053_v5 }
 0x34e   :  { %3014 = vmatprep.subr.bf16.mxu1 %v3013_v53 }
 0x34f   :  { %3016 = vmatpush1.bf16.msra.mxu1 %v3015_v55 }
 0x350   :  { %3018 = vmatprep.subr.bf16.mxu1 %v3017_v28 }
 0x352   :  { %2131 = vmatmul.mubr.f32.vlgmr.msra.gmra.mrb[16].mxu1 %v4257_v21 }
 0x353   :  { %3020 = vmatpush1.bf16.msra.mxu1 %v3019_v12  ;;  %2217 = vmatprep.mubr.f32.mxu1 %v3223_v60 }
 0x354   :  { %3022 = vmatprep.subr.bf16.mxu1 %v3021_v14 }
 0x357   :  { %3024 = vmatpush1.bf16.msra.mxu1 %v3023_v3 }
 0x358   :  { %3026 = vmatprep.subr.bf16.mxu1 %v4268_v34 }
 0x35a   :  { %2220 = vmatmul.mubr.f32.vlgmr.msra.gmra.mrb[16].mxu1 %v4262_v62 }
 0x35b   :  { %3028 = vmatpush1.bf16.msra.mxu1 %v4264_v37  ;;  %2298 = vmatprep.mubr.f32.mxu1 %v3223_v60 }
 0x35c   :  { %3030 = vmatprep.subr.bf16.mxu1 %v3005_v16 }
 0x35f   :  { %3032 = vmatpush1.bf16.msra.mxu1 %v3007_v15 }
 0x360   :  { %3034 = vmatprep.subr.bf16.mxu1 %v3033_v52 }
 0x362   :  { %2302 = vmatmul.mubr.f32.vlgmr.msra.gmra.mrb[16].mxu1 %v2016_v47 }
 0x363   :  { %3036 = vmatpush1.bf16.msra.mxu1 %v3035_v4  ;;  %2396 = vmatprep.mubr.f32.mxu1 %v3223_v60 }
 0x364   :  { %3038 = vmatprep.subr.bf16.mxu1 %v3037_v32 }
 0x367   :  { %3040 = vmatpush1.bf16.msra.mxu1 %v3039_v46 }
 0x368   :  { %3042 = vmatprep.subr.bf16.mxu1 %v4268_v34  ;;  %v2491_v34 = vshrl.u32 %v2490_v29, 7 }
 0x36a   :  { %2398 = vmatmul.mubr.f32.vlgmr.msra.gmra.mrb[16].mxu1 %v4257_v21  ;;  %v2492_v6 = vsub.s32 %v2489_v7, %v2491_v34 }
 0x36b   :  { %3044 = vmatpush1.bf16.msra.mxu1 %v4264_v37  ;;  %2476 = vmatprep.mubr.f32.mxu1 %v3223_v60 }
 0x36c   :  { %3046 = vmatprep.subr.bf16.mxu1 %v3005_v16 }
 0x36f   :  { %3048 = vmatpush1.bf16.msra.mxu1 %v3007_v15 }
 0x372   :  { %2478 = vmatmul.mubr.f32.vlgmr.msra.gmra.mrb[16].mxu1 %v4257_v21 }
 0x41d   :  { %v2020_v61 = vpop.f32.mrb[8].mxu0 }
 0x41e   :  { %v2022_v63 = vpop.f32.mrb[9].mxu0  ;;  %v2021_v62 = vadd.f32 %v2020_v61, %v1937_v9 }
 0x41f   :  { %v2023_v13 = vadd.f32 %v2022_v63, %v1937_v9 }
 0x445   :  { %v2479_v37 = vpop.f32.mrb[16].mxu1 }
 0x446   :  { %v3074_v22 = vadd.f32 %v2479_v37, %v2021_v62  ;;  %v2481_v60 = vpop.f32.mrb[17].mxu1 }
 0x447   :  { %v3076_v47 = vadd.f32 %v2481_v60, %v2023_v13 }
 0x449   :  { %v2486_v39 = vcombine.low %v3074_v22, %v3076_v47 }
 0x44b   :  { %v2493_v21 = vrot.slane %v2486_v39, %v2492_v6 }
 0x44d   :  { %v2500_v11 = vrot.slane %v2493_v21, %v2492_v6 }
 0x44f   :  { %2506 = vst.msk [vmem:[#allocation3] sm:$0x3] %vm2504_vm2, %v2500_v11 }
 0x450   :  { %3209 = shalt.err (!%p3206_p4)
}
 0x451   :  { %s3210_s15 = scalar_lea.hbm %s4318_s6, 32 }
 0x452   :  { %p3211_p5 = scmp.ne.s32.totalorder %s4318_s6, %s3210_s15  ;;  %p3214_p6 = scmp.lt.u32.totalorder %s3210_s15, %s4318_s6 }
 0x454   :  { %p3216_p7 = pnand %p3214_p6, %p3211_p5 }
 0x456   :  { %3219 = shalt.err (!%p3216_p7)
}
 0x457   :  { %2516 = dma.vmem_to_hbm [thread:$0]  %s2514_s0, 32, %s4318_s6, [#allocation4]  }
 0x458   :  { %3220 = dma.done.wait [#allocation4], 32  }
 0x459   :  { %3221 = vsyncadd [#allocation4], 4294967264 }
 0x45a   :  { %2520 = vsyncpa [#allocation4], 1 }

</bundles_post_ra>
